<compile_context>
chip_gen: v7x
topology: tpu7x:2x2x1
jax: 0.10.0
libtpu: 0.0.40
codegen_flags: <defaults>
</compile_context>

<pallas_src>
import functools
import math

import jax
import jax.numpy as jnp
from jax.experimental import pallas as pl
from jax.experimental.pallas import tpu as pltpu

# ----- config (mirrors the SmileMistralConfig fields used by the module) -----
HIDDEN_SIZE = 64
NUM_HEADS = 4
HEAD_DIM = 16
NUM_KV_HEADS = 2
NUM_KV_GROUPS = NUM_HEADS // NUM_KV_HEADS
ROPE_THETA = 10000.0
ATTENTION_DROPOUT = 0.0  # dropout is a no-op (p=0 / eval mode)

BATCH = 2
SEQ = 8

QKV_OUT = (NUM_HEADS + 2 * NUM_KV_HEADS) * HEAD_DIM  # 64 + 32 + 32 = 128
CS_WIDTH = 128                                        # packed cos/sin table width


# --------------------------- fused Pallas kernel ------------------------------
def _fused_attention_kernel(x_ref, wqkv_ref, wo_ref, cs_ref, o_ref, *,
                            num_heads, num_kv_heads, head_dim, seq_len,
                            hidden_size):
    D = head_dim
    d2 = D // 2
    S = seq_len                      # power of 2 (needed for the xor batch test)
    groups = num_heads // num_kv_heads
    scale = 1.0 / math.sqrt(D)
    qw = num_heads * d2              # width of each Q half slab (32)
    kw = num_kv_heads * d2           # width of each K half slab (16)

    x = x_ref[...]                   # [B*S, H] fp32
    wqkv = wqkv_ref[...]             # [H, 128] bf16  (permuted fused Wqkv^T)
    wo = wo_ref[...]                 # [NH*D, H] bf16 (Wo^T)
    cs = cs_ref[...]                 # [B*S, 128] fp32 packed cos/sin table

    bs = x.shape[0]

    # Fused Q/K/V projection: one lane-dense MXU matmul for both batches.
    qkv = jnp.dot(x.astype(jnp.bfloat16), wqkv,
                  preferred_element_type=jnp.float32)          # [B*S, 128] fp32

    # Slab views (static lane slices of the 128-lane result).
    q1 = qkv[:, 0:qw]
    q2 = qkv[:, qw:2 * qw]
    k1 = qkv[:, 2 * qw:2 * qw + kw]
    k2 = qkv[:, 2 * qw + kw:2 * qw + 2 * kw]
    v = qkv[:, 2 * qw + 2 * kw:2 * qw + 2 * kw + num_kv_heads * D]

    # Pre-broadcast cos/sin slabs from the packed table.
    cq = cs[:, 0:qw]
    sq = cs[:, qw:2 * qw]
    ck = cs[:, 2 * qw:2 * qw + kw]
    sk = cs[:, 2 * qw + kw:2 * qw + 2 * kw]

    # Slab-wise RoPE (fp32 elementwise), once for Q, once for K:
    #   out1 = x1*cos - x2*sin ; out2 = x2*cos + x1*sin
    rq1 = q1 * cq - q2 * sq
    rq2 = q2 * cq + q1 * sq
    rk1 = k1 * ck - k2 * sk
    rk2 = k2 * ck + k1 * sk

    # Block-diagonal causal mask over the folded batch (no HBM input).
    # same-batch test uses xor (S is a power of two): (i ^ j) < S.
    ri = jax.lax.broadcasted_iota(jnp.int32, (bs, bs), 0)
    ci = jax.lax.broadcasted_iota(jnp.int32, (bs, bs), 1)
    valid = jnp.logical_and(jnp.bitwise_xor(ri, ci) < S, ci <= ri)
    mask = jnp.where(valid, 0.0, -1e9).astype(jnp.float32)

    qk_dims = (((1,), (1,)), ((), ()))             # q @ k^T without a transpose

    parts = []
    for g in range(num_kv_heads):                  # K/V work hoisted per KV head
        kh1 = rk1[:, g * d2:(g + 1) * d2].astype(jnp.bfloat16)
        kh2 = rk2[:, g * d2:(g + 1) * d2].astype(jnp.bfloat16)
        vh = v[:, g * D:(g + 1) * D].astype(jnp.bfloat16)
        for hg in range(groups):                   # GQA: both Q heads share this K/V
            h = g * groups + hg
            qh1 = rq1[:, h * d2:(h + 1) * d2].astype(jnp.bfloat16)
            qh2 = rq2[:, h * d2:(h + 1) * d2].astype(jnp.bfloat16)

            # scores = rope(q) @ rope(k)^T, split over the two halves.
            scores = jax.lax.dot_general(qh1, kh1, qk_dims,
                                         preferred_element_type=jnp.float32)
            scores = scores + jax.lax.dot_general(qh2, kh2, qk_dims,
                                                  preferred_element_type=jnp.float32)
            scores = scores * scale + mask                     # [B*S, B*S] fp32

            # softmax in fp32 (matches dtype=torch.float32 in the reference)
            m = jnp.max(scores, axis=-1, keepdims=True)
            p = jnp.exp(scores - m)
            denom = jnp.sum(p, axis=-1, keepdims=True)
            p = p * pl.reciprocal(denom, approx=True)

            parts.append(jnp.dot(p.astype(jnp.bfloat16), vh,
                                 preferred_element_type=jnp.float32))  # [B*S, D]

    # Single fused O-projection: [B*S, NH*D] @ [NH*D, H]
    attn_flat = jnp.concatenate(parts, axis=-1)                # [B*S, NH*D] fp32
    out = jnp.dot(attn_flat.astype(jnp.bfloat16), wo,
                  preferred_element_type=jnp.float32)          # [B*S, H] fp32
    o_ref[...] = out.astype(o_ref.dtype)


def smile_attention_forward(x2d, wqkv_t, wo_t, cs_table):
    BS, H = x2d.shape
    kernel = functools.partial(
        _fused_attention_kernel,
        num_heads=NUM_HEADS, num_kv_heads=NUM_KV_HEADS,
        head_dim=HEAD_DIM, seq_len=SEQ, hidden_size=H)
    return pl.pallas_call(
        kernel,
        out_shape=jax.ShapeDtypeStruct((BS, H), x2d.dtype),
        grid=(1,),  # batch folded: single grid step (v5e/v6e have one TC; on v7x
                    # benchmark against grid=(B,) + "parallel" before switching)
        in_specs=[
            pl.BlockSpec((BS, H), lambda i: (0, 0)),                 # hidden [B*S,H]
            pl.BlockSpec((H, QKV_OUT), lambda i: (0, 0)),            # fused Wqkv^T
            pl.BlockSpec((NUM_HEADS * HEAD_DIM, H), lambda i: (0, 0)),  # Wo^T
            pl.BlockSpec((BS, CS_WIDTH), lambda i: (0, 0)),          # cos/sin table
        ],
        out_specs=pl.BlockSpec((BS, H), lambda i: (0, 0)),
        compiler_params=pltpu.CompilerParams(
            dimension_semantics=("arbitrary",)),
    )(x2d, wqkv_t, wo_t, cs_table)


# ------------------------------ glue (plain JAX) ------------------------------
def rotary_cos_sin_half(position_ids, head_dim, theta):
    """cos/sin of the base frequencies only, shape [B, S, head_dim//2]."""
    inv_freq = 1.0 / (
        theta ** (jnp.arange(0, head_dim, 2, dtype=jnp.float32) / head_dim)
    )
    freqs = position_ids.astype(jnp.float32)[..., None] * inv_freq[None, None, :]
    return jnp.cos(freqs), jnp.sin(freqs)


class SmileMistralAttentionPallas:
    def __init__(self, key):
        kq, kk, kv, ko = jax.random.split(key, 4)
        s = 0.05
        d2 = HEAD_DIM // 2
        # fp32 master weights in PyTorch nn.Linear layout [out_features, in_features]
        self.wq = jax.random.normal(kq, (NUM_HEADS * HEAD_DIM, HIDDEN_SIZE), jnp.float32) * s
        self.wk = jax.random.normal(kk, (NUM_KV_HEADS * HEAD_DIM, HIDDEN_SIZE), jnp.float32) * s
        self.wv = jax.random.normal(kv, (NUM_KV_HEADS * HEAD_DIM, HIDDEN_SIZE), jnp.float32) * s
        self.wo = jax.random.normal(ko, (HIDDEN_SIZE, NUM_HEADS * HEAD_DIM), jnp.float32) * s

        # Fused + column-permuted + pre-transposed (+ bf16) kernel weight, built
        # ONCE at init. Column layout (lanes of the [*,128] QKV result):
        #   [ q_half1 (NH*d2=32) | q_half2 (32) | k_half1 (16) | k_half2 (16) | v (32) ]
        wq_r = self.wq.reshape(NUM_HEADS, 2, d2, HIDDEN_SIZE)
        wk_r = self.wk.reshape(NUM_KV_HEADS, 2, d2, HIDDEN_SIZE)
        rows = jnp.concatenate([
            wq_r[:, 0].reshape(NUM_HEADS * d2, HIDDEN_SIZE),
            wq_r[:, 1].reshape(NUM_HEADS * d2, HIDDEN_SIZE),
            wk_r[:, 0].reshape(NUM_KV_HEADS * d2, HIDDEN_SIZE),
            wk_r[:, 1].reshape(NUM_KV_HEADS * d2, HIDDEN_SIZE),
            self.wv,
        ], axis=0)                                              # [128, H]
        self.wqkv_t = rows.T.astype(jnp.bfloat16)               # [H, 128]
        self.wo_t = self.wo.T.astype(jnp.bfloat16)              # [NH*D, H]

    def __call__(self, hidden_states, attention_mask=None, position_ids=None):
        B, S, H = hidden_states.shape
        d2 = HEAD_DIM // 2
        if position_ids is None:
            position_ids = jnp.broadcast_to(
                jnp.arange(S, dtype=jnp.int32)[None, :], (B, S))

        # Packed lane-dense cos/sin table, pre-broadcast to the Q/K slab widths:
        # [ cosQ (32) | sinQ (32) | cosK (16) | sinK (16) | pad (32) ]
        cos_h, sin_h = rotary_cos_sin_half(position_ids, HEAD_DIM, ROPE_THETA)
        cosf = cos_h.reshape(B * S, d2)
        sinf = sin_h.reshape(B * S, d2)
        cq = jnp.tile(cosf, (1, NUM_HEADS))
        sq = jnp.tile(sinf, (1, NUM_HEADS))
        ck = jnp.tile(cosf, (1, NUM_KV_HEADS))
        sk = jnp.tile(sinf, (1, NUM_KV_HEADS))
        used = 2 * NUM_HEADS * d2 + 2 * NUM_KV_HEADS * d2
        pad = jnp.zeros((B * S, CS_WIDTH - used), jnp.float32)
        cs_table = jnp.concatenate([cq, sq, ck, sk, pad], axis=-1)  # [B*S, 128]

        x2d = hidden_states.reshape(B * S, H)
        out2d = smile_attention_forward(x2d, self.wqkv_t, self.wo_t, cs_table)
        out = out2d.reshape(B, S, H)
        # matches the PyTorch return signature (attn_output, attn_weights, past_key_value)
        return out, None, None


# ------------------------------ pure-JAX reference ----------------------------
def reference_forward(mod, hidden_states, attention_mask, position_ids):
    B, S, H = hidden_states.shape
    q = (hidden_states @ mod.wq.T).reshape(B, S, NUM_HEADS, HEAD_DIM).transpose(0, 2, 1, 3)
    k = (hidden_states @ mod.wk.T).reshape(B, S, NUM_KV_HEADS, HEAD_DIM).transpose(0, 2, 1, 3)
    v = (hidden_states @ mod.wv.T).reshape(B, S, NUM_KV_HEADS, HEAD_DIM).transpose(0, 2, 1, 3)

    cos_h, sin_h = rotary_cos_sin_half(position_ids, HEAD_DIM, ROPE_THETA)
    cos = jnp.concatenate([cos_h, cos_h], axis=-1)[:, None, :, :]
    sin = jnp.concatenate([sin_h, sin_h], axis=-1)[:, None, :, :]

    def rot_half(x):
        x1, x2 = x[..., : HEAD_DIM // 2], x[..., HEAD_DIM // 2:]
        return jnp.concatenate([-x2, x1], axis=-1)

    q = q * cos + rot_half(q) * sin
    k = k * cos + rot_half(k) * sin
    k = jnp.repeat(k, NUM_KV_GROUPS, axis=1)
    v = jnp.repeat(v, NUM_KV_GROUPS, axis=1)
    scores = jnp.einsum("bhqd,bhkd->bhqk", q, k) / math.sqrt(HEAD_DIM)
    scores = scores + attention_mask
    p = jax.nn.softmax(scores.astype(jnp.float32), axis=-1)
    out = jnp.einsum("bhqk,bhkd->bhqd", p, v)
    out = out.transpose(0, 2, 1, 3).reshape(B, S, NUM_HEADS * HEAD_DIM)
    return out @ mod.wo.T


# ----------------------------------- main --------------------------------------
if __name__ == "__main__":
    key = jax.random.PRNGKey(0)
    k_w, k_x = jax.random.split(key)

    module = SmileMistralAttentionPallas(k_w)

    hidden_states = jax.random.normal(k_x, (BATCH, SEQ, HIDDEN_SIZE), jnp.float32)
    position_ids = jnp.broadcast_to(jnp.arange(SEQ, dtype=jnp.int32)[None, :], (BATCH, SEQ))

    # additive causal mask [B, 1, S, S] (only used by the pure-JAX reference;
    # the Pallas kernel generates the equivalent block-diagonal causal mask in-kernel)
    row = jnp.arange(SEQ)[:, None]
    col = jnp.arange(SEQ)[None, :]
    causal = jnp.where(col <= row, 0.0, -1e9).astype(jnp.float32)
    attention_mask = jnp.broadcast_to(causal, (BATCH, 1, SEQ, SEQ))

    attn_out, attn_weights, past_kv = module(hidden_states, attention_mask, position_ids)
    attn_out = jax.block_until_ready(attn_out)

    ref = reference_forward(module, hidden_states, attention_mask, position_ids)
    assert attn_out.shape == (BATCH, SEQ, HIDDEN_SIZE)
    assert jnp.allclose(attn_out, ref, rtol=2e-2, atol=2e-2), (
        float(jnp.max(jnp.abs(attn_out - ref)))
    )

    print("KERNEL_OK")
</pallas_src>

<mosaic_0001>
module attributes {stable_mosaic.version = 11 : i64} {
  func.func @_fused_attention_kernel(%arg0: i32, %arg1: memref<16x64xf32, #tpu.memory_space<vmem>>, %arg2: memref<64x128xbf16, #tpu.memory_space<vmem>>, %arg3: memref<64x64xbf16, #tpu.memory_space<vmem>>, %arg4: memref<16x128xf32, #tpu.memory_space<vmem>>, %arg5: memref<16x64xf32, #tpu.memory_space<vmem>>) attributes {dimension_semantics = [#tpu.dimension_semantics<arbitrary>], iteration_bounds = array<i64: 1>, scalar_prefetch = 0 : i64, scratch_operands = 0 : i64, tpu.core_type = #tpu.core_type<tc>, window_params = [{pipeline_mode = #tpu.pipeline_mode<synchronous>, transform_indices = @transform_0, window_bounds = array<i64: 16, 64>}, {pipeline_mode = #tpu.pipeline_mode<synchronous>, transform_indices = @transform_1, window_bounds = array<i64: 64, 128>}, {pipeline_mode = #tpu.pipeline_mode<synchronous>, transform_indices = @transform_2, window_bounds = array<i64: 64, 64>}, {pipeline_mode = #tpu.pipeline_mode<synchronous>, transform_indices = @transform_3, window_bounds = array<i64: 16, 128>}, {pipeline_mode = #tpu.pipeline_mode<synchronous>, transform_indices = @transform_4, window_bounds = array<i64: 16, 64>}]} {
    %c0 = arith.constant 0 : index
    %c0_0 = arith.constant 0 : index
    %0 = vector.load %arg1[%c0, %c0_0] : memref<16x64xf32, #tpu.memory_space<vmem>>, vector<16x64xf32>
    %c0_1 = arith.constant 0 : index
    %c0_2 = arith.constant 0 : index
    %1 = vector.load %arg2[%c0_1, %c0_2] : memref<64x128xbf16, #tpu.memory_space<vmem>>, vector<64x128xbf16>
    %c0_3 = arith.constant 0 : index
    %c0_4 = arith.constant 0 : index
    %2 = vector.load %arg3[%c0_3, %c0_4] : memref<64x64xbf16, #tpu.memory_space<vmem>>, vector<64x64xbf16>
    %c0_5 = arith.constant 0 : index
    %c0_6 = arith.constant 0 : index
    %3 = vector.load %arg4[%c0_5, %c0_6] : memref<16x128xf32, #tpu.memory_space<vmem>>, vector<16x128xf32>
    %4 = arith.truncf %0 : vector<16x64xf32> to vector<16x64xbf16>
    %cst = arith.constant dense<0.000000e+00> : vector<16x128xf32>
    %5 = tpu.matmul %4, %1, %cst {dimension_numbers = #tpu.dot_dimension_numbers<[1], [0], [0], [1], [0, 0, 1, 1], [], []>} : vector<16x64xbf16>, vector<64x128xbf16>, vector<16x128xf32> -> vector<16x128xf32>
    %6 = vector.extract_strided_slice %5 {offsets = [0, 0], sizes = [16, 32], strides = [1, 1]} : vector<16x128xf32> to vector<16x32xf32>
    %7 = vector.extract_strided_slice %5 {offsets = [0, 32], sizes = [16, 32], strides = [1, 1]} : vector<16x128xf32> to vector<16x32xf32>
    %8 = vector.extract_strided_slice %5 {offsets = [0, 64], sizes = [16, 16], strides = [1, 1]} : vector<16x128xf32> to vector<16x16xf32>
    %9 = vector.extract_strided_slice %5 {offsets = [0, 80], sizes = [16, 16], strides = [1, 1]} : vector<16x128xf32> to vector<16x16xf32>
    %10 = vector.extract_strided_slice %5 {offsets = [0, 96], sizes = [16, 32], strides = [1, 1]} : vector<16x128xf32> to vector<16x32xf32>
    %11 = vector.extract_strided_slice %3 {offsets = [0, 0], sizes = [16, 32], strides = [1, 1]} : vector<16x128xf32> to vector<16x32xf32>
    %12 = vector.extract_strided_slice %3 {offsets = [0, 32], sizes = [16, 32], strides = [1, 1]} : vector<16x128xf32> to vector<16x32xf32>
    %13 = vector.extract_strided_slice %3 {offsets = [0, 64], sizes = [16, 16], strides = [1, 1]} : vector<16x128xf32> to vector<16x16xf32>
    %14 = vector.extract_strided_slice %3 {offsets = [0, 80], sizes = [16, 16], strides = [1, 1]} : vector<16x128xf32> to vector<16x16xf32>
    %15 = arith.mulf %6, %11 : vector<16x32xf32>
    %16 = arith.mulf %7, %12 : vector<16x32xf32>
    %17 = arith.subf %15, %16 : vector<16x32xf32>
    %18 = arith.mulf %7, %11 : vector<16x32xf32>
    %19 = arith.mulf %6, %12 : vector<16x32xf32>
    %20 = arith.addf %18, %19 : vector<16x32xf32>
    %21 = arith.mulf %8, %13 : vector<16x16xf32>
    %22 = arith.mulf %9, %14 : vector<16x16xf32>
    %23 = arith.subf %21, %22 : vector<16x16xf32>
    %24 = arith.mulf %9, %13 : vector<16x16xf32>
    %25 = arith.mulf %8, %14 : vector<16x16xf32>
    %26 = arith.addf %24, %25 : vector<16x16xf32>
    %27 = tpu.iota {dimensions = array<i32: 0>} : vector<16x16xi32>
    %28 = tpu.iota {dimensions = array<i32: 1>} : vector<16x16xi32>
    %29 = arith.xori %27, %28 : vector<16x16xi32>
    %c8_i32 = arith.constant 8 : i32
    %30 = vector.broadcast %c8_i32 : i32 to vector<16x16xi32>
    %31 = arith.cmpi slt, %29, %30 : vector<16x16xi32>
    %32 = arith.cmpi sle, %28, %27 : vector<16x16xi32>
    %33 = arith.andi %31, %32 : vector<16x16xi1>
    %cst_7 = arith.constant 0.000000e+00 : f32
    %cst_8 = arith.constant -1.000000e+09 : f32
    %34 = vector.broadcast %cst_7 : f32 to vector<16x16xf32>
    %35 = vector.broadcast %cst_8 : f32 to vector<16x16xf32>
    %36 = arith.select %33, %34, %35 : vector<16x16xi1>, vector<16x16xf32>
    %37 = vector.extract_strided_slice %23 {offsets = [0, 0], sizes = [16, 8], strides = [1, 1]} : vector<16x16xf32> to vector<16x8xf32>
    %38 = arith.truncf %37 : vector<16x8xf32> to vector<16x8xbf16>
    %39 = vector.extract_strided_slice %26 {offsets = [0, 0], sizes = [16, 8], strides = [1, 1]} : vector<16x16xf32> to vector<16x8xf32>
    %40 = arith.truncf %39 : vector<16x8xf32> to vector<16x8xbf16>
    %41 = vector.extract_strided_slice %10 {offsets = [0, 0], sizes = [16, 16], strides = [1, 1]} : vector<16x32xf32> to vector<16x16xf32>
    %42 = arith.truncf %41 : vector<16x16xf32> to vector<16x16xbf16>
    %43 = vector.extract_strided_slice %17 {offsets = [0, 0], sizes = [16, 8], strides = [1, 1]} : vector<16x32xf32> to vector<16x8xf32>
    %44 = arith.truncf %43 : vector<16x8xf32> to vector<16x8xbf16>
    %45 = vector.extract_strided_slice %20 {offsets = [0, 0], sizes = [16, 8], strides = [1, 1]} : vector<16x32xf32> to vector<16x8xf32>
    %46 = arith.truncf %45 : vector<16x8xf32> to vector<16x8xbf16>
    %cst_9 = arith.constant dense<0.000000e+00> : vector<16x16xf32>
    %47 = tpu.matmul %44, %38, %cst_9 {dimension_numbers = #tpu.dot_dimension_numbers<[1], [1], [0], [0], [0, 0, 1, 0], [], []>} : vector<16x8xbf16>, vector<16x8xbf16>, vector<16x16xf32> -> vector<16x16xf32>
    %cst_10 = arith.constant dense<0.000000e+00> : vector<16x16xf32>
    %48 = tpu.matmul %46, %40, %cst_10 {dimension_numbers = #tpu.dot_dimension_numbers<[1], [1], [0], [0], [0, 0, 1, 0], [], []>} : vector<16x8xbf16>, vector<16x8xbf16>, vector<16x16xf32> -> vector<16x16xf32>
    %49 = arith.addf %47, %48 : vector<16x16xf32>
    %cst_11 = arith.constant 2.500000e-01 : f32
    %50 = vector.broadcast %cst_11 : f32 to vector<16x16xf32>
    %51 = arith.mulf %49, %50 : vector<16x16xf32>
    %52 = arith.addf %51, %36 : vector<16x16xf32>
    %cst_12 = arith.constant dense<0xFF800000> : vector<16xf32>
    %53 = vector.multi_reduction <maximumf>, %52, %cst_12 [1] : vector<16x16xf32> to vector<16xf32>
    %54 = vector.shape_cast %53 : vector<16xf32> to vector<16x1xf32>
    %55 = vector.broadcast %54 : vector<16x1xf32> to vector<16x16xf32>
    %56 = arith.subf %52, %55 : vector<16x16xf32>
    %57 = math.exp %56 : vector<16x16xf32>
    %cst_13 = arith.constant dense<0.000000e+00> : vector<16xf32>
    %58 = vector.multi_reduction <add>, %57, %cst_13 [1] : vector<16x16xf32> to vector<16xf32>
    %59 = vector.shape_cast %58 : vector<16xf32> to vector<16x1xf32>
    %60 = tpu.reciprocal %59 {approx = true} : vector<16x1xf32> -> vector<16x1xf32>
    %61 = vector.broadcast %60 : vector<16x1xf32> to vector<16x16xf32>
    %62 = arith.mulf %57, %61 : vector<16x16xf32>
    %63 = arith.truncf %62 : vector<16x16xf32> to vector<16x16xbf16>
    %cst_14 = arith.constant dense<0.000000e+00> : vector<16x16xf32>
    %64 = tpu.matmul %63, %42, %cst_14 {dimension_numbers = #tpu.dot_dimension_numbers<[1], [0], [0], [1], [0, 0, 1, 1], [], []>} : vector<16x16xbf16>, vector<16x16xbf16>, vector<16x16xf32> -> vector<16x16xf32>
    %65 = vector.extract_strided_slice %17 {offsets = [0, 8], sizes = [16, 8], strides = [1, 1]} : vector<16x32xf32> to vector<16x8xf32>
    %66 = arith.truncf %65 : vector<16x8xf32> to vector<16x8xbf16>
    %67 = vector.extract_strided_slice %20 {offsets = [0, 8], sizes = [16, 8], strides = [1, 1]} : vector<16x32xf32> to vector<16x8xf32>
    %68 = arith.truncf %67 : vector<16x8xf32> to vector<16x8xbf16>
    %cst_15 = arith.constant dense<0.000000e+00> : vector<16x16xf32>
    %69 = tpu.matmul %66, %38, %cst_15 {dimension_numbers = #tpu.dot_dimension_numbers<[1], [1], [0], [0], [0, 0, 1, 0], [], []>} : vector<16x8xbf16>, vector<16x8xbf16>, vector<16x16xf32> -> vector<16x16xf32>
    %cst_16 = arith.constant dense<0.000000e+00> : vector<16x16xf32>
    %70 = tpu.matmul %68, %40, %cst_16 {dimension_numbers = #tpu.dot_dimension_numbers<[1], [1], [0], [0], [0, 0, 1, 0], [], []>} : vector<16x8xbf16>, vector<16x8xbf16>, vector<16x16xf32> -> vector<16x16xf32>
    %71 = arith.addf %69, %70 : vector<16x16xf32>
    %cst_17 = arith.constant 2.500000e-01 : f32
    %72 = vector.broadcast %cst_17 : f32 to vector<16x16xf32>
    %73 = arith.mulf %71, %72 : vector<16x16xf32>
    %74 = arith.addf %73, %36 : vector<16x16xf32>
    %cst_18 = arith.constant dense<0xFF800000> : vector<16xf32>
    %75 = vector.multi_reduction <maximumf>, %74, %cst_18 [1] : vector<16x16xf32> to vector<16xf32>
    %76 = vector.shape_cast %75 : vector<16xf32> to vector<16x1xf32>
    %77 = vector.broadcast %76 : vector<16x1xf32> to vector<16x16xf32>
    %78 = arith.subf %74, %77 : vector<16x16xf32>
    %79 = math.exp %78 : vector<16x16xf32>
    %cst_19 = arith.constant dense<0.000000e+00> : vector<16xf32>
    %80 = vector.multi_reduction <add>, %79, %cst_19 [1] : vector<16x16xf32> to vector<16xf32>
    %81 = vector.shape_cast %80 : vector<16xf32> to vector<16x1xf32>
    %82 = tpu.reciprocal %81 {approx = true} : vector<16x1xf32> -> vector<16x1xf32>
    %83 = vector.broadcast %82 : vector<16x1xf32> to vector<16x16xf32>
    %84 = arith.mulf %79, %83 : vector<16x16xf32>
    %85 = arith.truncf %84 : vector<16x16xf32> to vector<16x16xbf16>
    %cst_20 = arith.constant dense<0.000000e+00> : vector<16x16xf32>
    %86 = tpu.matmul %85, %42, %cst_20 {dimension_numbers = #tpu.dot_dimension_numbers<[1], [0], [0], [1], [0, 0, 1, 1], [], []>} : vector<16x16xbf16>, vector<16x16xbf16>, vector<16x16xf32> -> vector<16x16xf32>
    %87 = vector.extract_strided_slice %23 {offsets = [0, 8], sizes = [16, 8], strides = [1, 1]} : vector<16x16xf32> to vector<16x8xf32>
    %88 = arith.truncf %87 : vector<16x8xf32> to vector<16x8xbf16>
    %89 = vector.extract_strided_slice %26 {offsets = [0, 8], sizes = [16, 8], strides = [1, 1]} : vector<16x16xf32> to vector<16x8xf32>
    %90 = arith.truncf %89 : vector<16x8xf32> to vector<16x8xbf16>
    %91 = vector.extract_strided_slice %10 {offsets = [0, 16], sizes = [16, 16], strides = [1, 1]} : vector<16x32xf32> to vector<16x16xf32>
    %92 = arith.truncf %91 : vector<16x16xf32> to vector<16x16xbf16>
    %93 = vector.extract_strided_slice %17 {offsets = [0, 16], sizes = [16, 8], strides = [1, 1]} : vector<16x32xf32> to vector<16x8xf32>
    %94 = arith.truncf %93 : vector<16x8xf32> to vector<16x8xbf16>
    %95 = vector.extract_strided_slice %20 {offsets = [0, 16], sizes = [16, 8], strides = [1, 1]} : vector<16x32xf32> to vector<16x8xf32>
    %96 = arith.truncf %95 : vector<16x8xf32> to vector<16x8xbf16>
    %cst_21 = arith.constant dense<0.000000e+00> : vector<16x16xf32>
    %97 = tpu.matmul %94, %88, %cst_21 {dimension_numbers = #tpu.dot_dimension_numbers<[1], [1], [0], [0], [0, 0, 1, 0], [], []>} : vector<16x8xbf16>, vector<16x8xbf16>, vector<16x16xf32> -> vector<16x16xf32>
    %cst_22 = arith.constant dense<0.000000e+00> : vector<16x16xf32>
    %98 = tpu.matmul %96, %90, %cst_22 {dimension_numbers = #tpu.dot_dimension_numbers<[1], [1], [0], [0], [0, 0, 1, 0], [], []>} : vector<16x8xbf16>, vector<16x8xbf16>, vector<16x16xf32> -> vector<16x16xf32>
    %99 = arith.addf %97, %98 : vector<16x16xf32>
    %cst_23 = arith.constant 2.500000e-01 : f32
    %100 = vector.broadcast %cst_23 : f32 to vector<16x16xf32>
    %101 = arith.mulf %99, %100 : vector<16x16xf32>
    %102 = arith.addf %101, %36 : vector<16x16xf32>
    %cst_24 = arith.constant dense<0xFF800000> : vector<16xf32>
    %103 = vector.multi_reduction <maximumf>, %102, %cst_24 [1] : vector<16x16xf32> to vector<16xf32>
    %104 = vector.shape_cast %103 : vector<16xf32> to vector<16x1xf32>
    %105 = vector.broadcast %104 : vector<16x1xf32> to vector<16x16xf32>
    %106 = arith.subf %102, %105 : vector<16x16xf32>
    %107 = math.exp %106 : vector<16x16xf32>
    %cst_25 = arith.constant dense<0.000000e+00> : vector<16xf32>
    %108 = vector.multi_reduction <add>, %107, %cst_25 [1] : vector<16x16xf32> to vector<16xf32>
    %109 = vector.shape_cast %108 : vector<16xf32> to vector<16x1xf32>
    %110 = tpu.reciprocal %109 {approx = true} : vector<16x1xf32> -> vector<16x1xf32>
    %111 = vector.broadcast %110 : vector<16x1xf32> to vector<16x16xf32>
    %112 = arith.mulf %107, %111 : vector<16x16xf32>
    %113 = arith.truncf %112 : vector<16x16xf32> to vector<16x16xbf16>
    %cst_26 = arith.constant dense<0.000000e+00> : vector<16x16xf32>
    %114 = tpu.matmul %113, %92, %cst_26 {dimension_numbers = #tpu.dot_dimension_numbers<[1], [0], [0], [1], [0, 0, 1, 1], [], []>} : vector<16x16xbf16>, vector<16x16xbf16>, vector<16x16xf32> -> vector<16x16xf32>
    %115 = vector.extract_strided_slice %17 {offsets = [0, 24], sizes = [16, 8], strides = [1, 1]} : vector<16x32xf32> to vector<16x8xf32>
    %116 = arith.truncf %115 : vector<16x8xf32> to vector<16x8xbf16>
    %117 = vector.extract_strided_slice %20 {offsets = [0, 24], sizes = [16, 8], strides = [1, 1]} : vector<16x32xf32> to vector<16x8xf32>
    %118 = arith.truncf %117 : vector<16x8xf32> to vector<16x8xbf16>
    %cst_27 = arith.constant dense<0.000000e+00> : vector<16x16xf32>
    %119 = tpu.matmul %116, %88, %cst_27 {dimension_numbers = #tpu.dot_dimension_numbers<[1], [1], [0], [0], [0, 0, 1, 0], [], []>} : vector<16x8xbf16>, vector<16x8xbf16>, vector<16x16xf32> -> vector<16x16xf32>
    %cst_28 = arith.constant dense<0.000000e+00> : vector<16x16xf32>
    %120 = tpu.matmul %118, %90, %cst_28 {dimension_numbers = #tpu.dot_dimension_numbers<[1], [1], [0], [0], [0, 0, 1, 0], [], []>} : vector<16x8xbf16>, vector<16x8xbf16>, vector<16x16xf32> -> vector<16x16xf32>
    %121 = arith.addf %119, %120 : vector<16x16xf32>
    %cst_29 = arith.constant 2.500000e-01 : f32
    %122 = vector.broadcast %cst_29 : f32 to vector<16x16xf32>
    %123 = arith.mulf %121, %122 : vector<16x16xf32>
    %124 = arith.addf %123, %36 : vector<16x16xf32>
    %cst_30 = arith.constant dense<0xFF800000> : vector<16xf32>
    %125 = vector.multi_reduction <maximumf>, %124, %cst_30 [1] : vector<16x16xf32> to vector<16xf32>
    %126 = vector.shape_cast %125 : vector<16xf32> to vector<16x1xf32>
    %127 = vector.broadcast %126 : vector<16x1xf32> to vector<16x16xf32>
    %128 = arith.subf %124, %127 : vector<16x16xf32>
    %129 = math.exp %128 : vector<16x16xf32>
    %cst_31 = arith.constant dense<0.000000e+00> : vector<16xf32>
    %130 = vector.multi_reduction <add>, %129, %cst_31 [1] : vector<16x16xf32> to vector<16xf32>
    %131 = vector.shape_cast %130 : vector<16xf32> to vector<16x1xf32>
    %132 = tpu.reciprocal %131 {approx = true} : vector<16x1xf32> -> vector<16x1xf32>
    %133 = vector.broadcast %132 : vector<16x1xf32> to vector<16x16xf32>
    %134 = arith.mulf %129, %133 : vector<16x16xf32>
    %135 = arith.truncf %134 : vector<16x16xf32> to vector<16x16xbf16>
    %cst_32 = arith.constant dense<0.000000e+00> : vector<16x16xf32>
    %136 = tpu.matmul %135, %92, %cst_32 {dimension_numbers = #tpu.dot_dimension_numbers<[1], [0], [0], [1], [0, 0, 1, 1], [], []>} : vector<16x16xbf16>, vector<16x16xbf16>, vector<16x16xf32> -> vector<16x16xf32>
    %137 = tpu.concatenate %64, %86, %114, %136 in 1 : vector<16x16xf32>, vector<16x16xf32>, vector<16x16xf32>, vector<16x16xf32> -> vector<16x64xf32>
    %138 = arith.truncf %137 : vector<16x64xf32> to vector<16x64xbf16>
    %cst_33 = arith.constant dense<0.000000e+00> : vector<16x64xf32>
    %139 = tpu.matmul %138, %2, %cst_33 {dimension_numbers = #tpu.dot_dimension_numbers<[1], [0], [0], [1], [0, 0, 1, 1], [], []>} : vector<16x64xbf16>, vector<64x64xbf16>, vector<16x64xf32> -> vector<16x64xf32>
    %c0_34 = arith.constant 0 : index
    %c0_35 = arith.constant 0 : index
    %140 = vector.load %arg5[%c0_34, %c0_35] : memref<16x64xf32, #tpu.memory_space<vmem>>, vector<16x64xf32>
    tpu.vector_store %arg5[%c0_34, %c0_35], %139 {strides = array<i32>} : memref<16x64xf32, #tpu.memory_space<vmem>>, vector<16x64xf32>,
    return
  }
  func.func @transform_0(%arg0: i32) -> (i32, i32) {
    %c0_i32 = arith.constant 0 : i32
    %c0_i32_0 = arith.constant 0 : i32
    %c0_i32_1 = arith.constant 0 : i32
    return %c0_i32, %c0_i32_0 : i32, i32
  }
  func.func @transform_1(%arg0: i32) -> (i32, i32) {
    %c0_i32 = arith.constant 0 : i32
    %c0_i32_0 = arith.constant 0 : i32
    %c0_i32_1 = arith.constant 0 : i32
    return %c0_i32, %c0_i32_0 : i32, i32
  }
  func.func @transform_2(%arg0: i32) -> (i32, i32) {
    %c0_i32 = arith.constant 0 : i32
    %c0_i32_0 = arith.constant 0 : i32
    %c0_i32_1 = arith.constant 0 : i32
    return %c0_i32, %c0_i32_0 : i32, i32
  }
  func.func @transform_3(%arg0: i32) -> (i32, i32) {
    %c0_i32 = arith.constant 0 : i32
    %c0_i32_0 = arith.constant 0 : i32
    %c0_i32_1 = arith.constant 0 : i32
    return %c0_i32, %c0_i32_0 : i32, i32
  }
  func.func @transform_4(%arg0: i32) -> (i32, i32) {
    %c0_i32 = arith.constant 0 : i32
    %c0_i32_0 = arith.constant 0 : i32
    %c0_i32_1 = arith.constant 0 : i32
    return %c0_i32, %c0_i32_0 : i32, i32
  }
}

</mosaic_0001>

<bundles_post_ra>
// kernel: tpu_custom_call.1
= control target key start
LH: loop header
LB: loop body
LE: loop exit
PB: predicated region body
PF: predicated region fallthrough
CT: control target
= control target key end

     0   :  { %9 = vsyncpa [#allocation3], 0  ;;  %s1737_s0 = inlined_call_operand.hbm [shape: f32[16,64], index: 0, kind: input, shape index: {}]   ;;  %s1738_s1 = inlined_call_operand.hbm [shape: bf16[64,128], index: 1, kind: input, shape index: {}]   ;;  %s1739_s2 = inlined_call_operand.hbm [shape: bf16[64,64], index: 2, kind: input, shape index: {}]   ;;  %s1740_s3 = inlined_call_operand.hbm [shape: f32[16,128], index: 3, kind: input, shape index: {}]   ;;  %s1741_s4 = inlined_call_operand.hbm [shape: f32[16,64], index: 4, kind: output, shape index: {}]  }
   0x1   :  { %10 = vsyncpa [#allocation6], 0 }
   0x2   :  { %11 = vsyncpa [#allocation9], 0 }
   0x3   :  { %12 = vsyncpa [#allocation4], 0  ;;  %s1428_s15 = smov [#allocation5]   ;;  %s1310_s19 = scalar_lea.hbm %s1738_s1, 512 }
   0x4   :  { %s30_s16 = sshll.u32 %s1428_s15, 4  ;;  %p1311_p0 = scmp.ne.s32.totalorder %s1738_s1, %s1310_s19  ;;  %s31_s16 = int_to_ptr.vmem [resolvable:$true] %s30_s16 }
   0x5   :  { %p1314_p1 = scmp.lt.u32.totalorder %s1310_s19, %s1738_s1 }
   0x7   :  { %p1316_p2 = pnand %p1314_p1, %p1311_p0 }
   0x9   :  { %1319 = shalt.err (!%p1316_p2)
}
   0xa   :  { %s1320_s24 = scalar_lea.vmem %s31_s16, 512  ;;  %p1325_p4 = scmp.lt.s32.totalorder %s31_s16, %s31_s16 }
   0xb   :  { %p1321_p3 = scmp.ne.s32.totalorder %s31_s16, %s1320_s24  ;;  %p1326_p5 = scmp.lt.s32.totalorder %s1320_s24, %s1320_s24 }
   0xd   :  { %p1327_p6 = por %p1326_p5, %p1325_p4 }
   0xf   :  { %p1328_p7 = pnand %p1327_p6, %p1321_p3 }
  0x11   :  { %1331 = shalt.err (!%p1328_p7)
}
  0x12   :  { %s1429_s25 = smov 64   ;;  %s1430_s26 = smov 4  }
  0x13   :  { %36 = dma.hbm_to_vmem [thread:$0]  %s1738_s1, 512, %s31_s16, [#allocation6], %s1429_s25, %s1429_s25, %s1430_s26  }
  0x14   :  { %s1431_s29 = smov [#allocation2]   ;;  %s1332_s7 = scalar_lea.hbm %s1737_s0, 256 }
  0x15   :  { %s18_s30 = sshll.u32 %s1431_s29, 4  ;;  %p1333_p8 = scmp.ne.s32.totalorder %s1737_s0, %s1332_s7  ;;  %s19_s30 = int_to_ptr.vmem [resolvable:$true] %s18_s30 }
  0x16   :  { %p1336_p9 = scmp.lt.u32.totalorder %s1332_s7, %s1737_s0 }
  0x18   :  { %p1338_p10 = pnand %p1336_p9, %p1333_p8 }
  0x1a   :  { %1341 = shalt.err (!%p1338_p10)
}
  0x1b   :  { %s1342_s12 = scalar_lea.vmem %s19_s30, 256  ;;  %p1347_p12 = scmp.lt.s32.totalorder %s19_s30, %s19_s30 }
  0x1c   :  { %p1343_p11 = scmp.ne.s32.totalorder %s19_s30, %s1342_s12  ;;  %p1348_p13 = scmp.lt.s32.totalorder %s1342_s12, %s1342_s12 }
  0x1e   :  { %p1349_p0 = por %p1348_p13, %p1347_p12 }
  0x20   :  { %p1350_p1 = pnand %p1349_p0, %p1343_p11 }
  0x22   :  { %1353 = shalt.err (!%p1350_p1)
}
  0x23   :  { %s1432_s1 = smov 128   ;;  %s1433_s13 = smov 8  }
  0x24   :  { %24 = dma.hbm_to_vmem [thread:$0]  %s1737_s0, 256, %s19_s30, [#allocation3], %s1432_s1, %s1432_s1, %s1433_s13  }
  0x25   :  { %s1434_s16 = smov [#allocation7]   ;;  %s1435_s18 = smov [#allocation8]  }
  0x26   :  { %s42_s17 = sshll.u32 %s1434_s16, 4  ;;  %s54_s19 = sshll.u32 %s1435_s18, 4  ;;  %s43_s17 = int_to_ptr.vmem [resolvable:$true] %s42_s17  ;;  %s1507_s19 = int_to_ptr.vmem [resolvable:$true] %s54_s19 }
  0x27   :  { %s1354_s22 = scalar_lea.hbm %s1739_s2, 512 }
  0x28   :  { %p1355_p2 = scmp.ne.s32.totalorder %s1739_s2, %s1354_s22  ;;  %p1358_p3 = scmp.lt.u32.totalorder %s1354_s22, %s1739_s2 }
  0x2a   :  { %p1360_p4 = pnand %p1358_p3, %p1355_p2 }
  0x2c   :  { %1363 = shalt.err (!%p1360_p4)
}
  0x2d   :  { %s1364_s0 = scalar_lea.vmem %s43_s17, 512  ;;  %p1369_p6 = scmp.lt.s32.totalorder %s43_s17, %s43_s17 }
  0x2e   :  { %p1365_p5 = scmp.ne.s32.totalorder %s43_s17, %s1364_s0  ;;  %p1370_p7 = scmp.lt.s32.totalorder %s1364_s0, %s1364_s0 }
  0x30   :  { %p1371_p8 = por %p1370_p7, %p1369_p6 }
  0x32   :  { %p1372_p9 = pnand %p1371_p8, %p1365_p5 }
  0x34   :  { %1375 = shalt.err (!%p1372_p9)
}
  0x35   :  { %48 = dma.hbm_to_vmem [thread:$0]  %s1739_s2, 512, %s43_s17, [#allocation6], %s1429_s25, %s1429_s25, %s1430_s26  }
  0x36   :  { %s1376_s7 = scalar_lea.hbm %s1740_s3, 256 }
  0x37   :  { %p1377_p10 = scmp.ne.s32.totalorder %s1740_s3, %s1376_s7  ;;  %p1380_p11 = scmp.lt.u32.totalorder %s1376_s7, %s1740_s3 }
  0x39   :  { %p1382_p12 = pnand %p1380_p11, %p1377_p10 }
  0x3b   :  { %1385 = shalt.err (!%p1382_p12)
}
  0x3c   :  { %s1386_s12 = scalar_lea.vmem %s1507_s19, 256  ;;  %p1391_p0 = scmp.lt.s32.totalorder %s1507_s19, %s1507_s19 }
  0x3d   :  { %p1387_p13 = scmp.ne.s32.totalorder %s1507_s19, %s1386_s12  ;;  %p1392_p1 = scmp.lt.s32.totalorder %s1386_s12, %s1386_s12 }
  0x3f   :  { %p1393_p2 = por %p1392_p1, %p1391_p0 }
  0x41   :  { %p1394_p3 = pnand %p1393_p2, %p1387_p13 }
  0x43   :  { %1397 = shalt.err (!%p1394_p3)
}
  0x44   :  { %60 = dma.hbm_to_vmem [thread:$0]  %s1740_s3, 256, %s1507_s19, [#allocation9], %s1432_s1, %s1432_s1, %s1433_s13  }
  0x45   :  { %1420 = dma.done.wait [#allocation3], 256  }
  0x46   :  { %1421 = vsyncadd [#allocation3], 4294967040 }
  0x47   :  { %1422 = dma.done.wait [#allocation6], 1024  }
  0x48   :  { %1423 = vsyncadd [#allocation6], 4294966272 }
  0x49   :  { %1424 = dma.done.wait [#allocation9], 256  }
  0x4a   :  { %1425 = vsyncadd [#allocation9], 4294967040  ;;  %v1436_v0 = vmov 0.0   ;;  %vm1437_vm0 = vmmov 0   ;;  %v1270_v1 = vld [vmem:[#allocation5] sm:$0xff]   ;;  %v1271_v2 = vld [vmem:[#allocation5 + $0x8] sm:$0xff]   ;;  %v238_v58 = vlaneseq }
  0x4b   :  { %1119 = vmatprep.subr.bf16.mxu0 %v1436_v0  ;;  %1127 = vmatprep.mubr.msk.bf16.mxu0 %vm1437_vm0, %v1436_v0  ;;  %v1272_v3 = vld [vmem:[#allocation5 + $0x10] sm:$0xff]   ;;  %v92_v4 = vld [vmem:[#allocation8] sm:$0xff]  ;;  %s1438_s3 = smov 112   ;;  %s1439_s14 = smov 96   ;;  %v93_v5 = vld [vmem:[#allocation8 + $0x8] sm:$0xff]  ;;  %vm119_vm1 = vcmask 523264  }
  0x4c   :  { %1131 = vmatprep.subr.bf16.mxu1 %v1436_v0  ;;  %1133 = vmatprep.mubr.msk.bf16.mxu1 %vm1437_vm0, %v1436_v0  ;;  %v1273_v6 = vld [vmem:[#allocation5 + $0x18] sm:$0xff]   ;;  %v74_v7 = vld [vmem:[#allocation2] sm:$0xff]  ;;  %s1440_s15 = smov 16   ;;  %s1441_s16 = smov 32   ;;  %vm264_vm2 = vcmask 64512   ;;  %v239_v59 = vshrl.u32 %v238_v58, 7 }
  0x4d   :  { %1120 = vmatpush3.bf16.msra.mxu0 %v1270_v1  ;;  %220 = vrot.lane.b32.xlu0 %v92_v4, %s1438_s3  ;;  %v75_v8 = vld [vmem:[#allocation2 + $0x8] sm:$0xff]  ;;  %s1442_s17 = smov 48   ;;  %v242_v60 = vand.u32 127, %v238_v58  ;;  %vm366_vm9 = vcmask 130048   ;;  %s1445_s18 = smov 120   ;;  %vm967_vm10 = vcmask 261120  }
  0x4e   :  { %1121 = vmatprep.subr.bf16.mxu0 %v1436_v0  ;;  %186 = vrot.lane.b32.xlu1 %v92_v4, %s1439_s14  ;;  %v94_v9 = vpack.c.bf16 %v75_v8, %v74_v7  ;;  %v240_v61 = vadd.s32 8, %v239_v59  ;;  %s1446_s19 = smov 40   ;;  %s1447_s20 = smov 56   ;;  %vm970_vm11 = vcmask 392192  }
  0x4f   :  { %v243_v62 = vxor.u32 %v242_v60, %v239_v59  ;;  %vm247_vm4 = vcmp.le.s32.totalorder %v242_v60, %v239_v59  ;;  %s1448_s21 = smov 80   ;;  %s1449_s22 = smov 104  }
  0x50   :  { %v244_v63 = vxor.u32 %v242_v60, %v240_v61  ;;  %vm248_vm6 = vcmp.le.s32.totalorder %v242_v60, %v240_v61  ;;  %s1450_s23 = smov 72   ;;  %s1451_s24 = smov [#allocation10]  }
  0x51   :  { %1122 = vmatpush3.bf16.msra.mxu0 %v1271_v2  ;;  %222 = vrot.lane.b32.xlu0 %v93_v5, %s1438_s3  ;;  %vm245_vm3 = vcmp.lt.s32.totalorder %v243_v62, 8  ;;  %v1443_v2 = vmov -1e+09   ;;  %s1049_s27 = sshll.u32 %s1451_s24, 4  ;;  %s1050_s27 = int_to_ptr.vmem [resolvable:$true] %s1049_s27 }
  0x52   :  { %1123 = vmatprep.subr.bf16.mxu0 %v1436_v0  ;;  %188 = vrot.lane.b32.xlu1 %v93_v5, %s1439_s14  ;;  %vm246_vm5 = vcmp.lt.s32.totalorder %v244_v63, 8  ;;  %vm249_vm7 = vmand %vm245_vm3, %vm247_vm4  ;;  %s1398_s28 = scalar_lea.vmem %s1050_s27, 256  ;;  %p1403_p5 = scmp.lt.s32.totalorder %s1050_s27, %s1050_s27 }
  0x53   :  { %vm250_vm8 = vmand %vm246_vm5, %vm248_vm6  ;;  %p1399_p4 = scmp.ne.s32.totalorder %s1050_s27, %s1398_s28  ;;  %p1404_p6 = scmp.lt.s32.totalorder %s1398_s28, %s1398_s28 }
  0x54   :  { %v1608_v7 = vsel %vm250_vm8, 0.0, %v1443_v2 }
  0x55   :  { %1124 = vmatpush3.bf16.msra.mxu0 %v1272_v3  ;;  %212 = vrot.lane.b32.xlu0 %v92_v4, %s1440_s15  ;;  %v1606_v3 = vsel %vm249_vm7, 0.0, %v1443_v2  ;;  %p1405_p7 = por %p1404_p6, %p1403_p5 }
  0x56   :  { %1125 = vmatprep.subr.bf16.mxu0 %v1436_v0  ;;  %214 = vrot.lane.b32.xlu1 %v93_v5, %s1440_s15 }
  0x57   :  { %p1406_p8 = pnand %p1405_p7, %p1399_p4 }
  0x59   :  { %1126 = vmatpush3.bf16.msra.mxu0 %v1273_v6 }
  0x5a   :  { %1161 = vmatprep.subr.bf16.mxu0 %v1436_v0 }
  0x5c   :  { %1128 = vmatmul.mubr.msk.bf16.vlgmr.msra.gmra.mrb[0].mxu0 %vm119_vm1, %v94_v9 }
  0x5d   :  { %1163 = vmatprep.mubr.msk.bf16.mxu0 %vm1437_vm0, %v1436_v0 }
  0xbf   :  { %v221_v10 = vpop.permute.xlu0 %220 }
  0xc0   :  { %v187_v18 = vpop.permute.xlu1 %186 }
  0xc3   :  { %v223_v14 = vpop.permute.xlu0 %222 }
  0xc4   :  { %v189_v21 = vpop.permute.xlu1 %188 }
  0xc7   :  { %v213_v25 = vpop.permute.xlu0 %212 }
  0xc8   :  { %v215_v26 = vpop.permute.xlu1 %214 }
 0x12f   :  { %v157_v11 = vpop.f32.mrb[0].mxu0 }
 0x130   :  { %v1129_v12 = vpop.f32.mrb[1].mxu0  ;;  %v226_v13 = vmul.f32 %v221_v10, %v157_v11  ;;  %v192_v20 = vmul.f32 %v187_v18, %v157_v11  ;;  %v164_v23 = vmul.f32 %v157_v11, %v92_v4  ;;  %v218_v28 = vmul.f32 %v213_v25, %v157_v11 }
 0x131   :  { %v160_v15 = vpop.f32.mrb[2].mxu0 }
 0x132   :  { %230 = vrot.lane.b32.xlu0 %v226_v13, %s1440_s15  ;;  %v1130_v16 = vpop.f32.mrb[3].mxu0  ;;  %v227_v17 = vmul.f32 %v223_v14, %v160_v15  ;;  %v1564_v19 = vpack.c.bf16 %v160_v15, %v157_v11  ;;  %v193_v22 = vmul.f32 %v189_v21, %v160_v15  ;;  %v165_v24 = vmul.f32 %v160_v15, %v93_v5 }
 0x133   :  { %v219_v29 = vmul.f32 %v215_v26, %v160_v15 }
 0x134   :  { %232 = vrot.lane.b32.xlu1 %v227_v17, %s1440_s15 }
 0x136   :  { %178 = vrot.lane.b32.xlu0 %v92_v4, %s1441_s16 }
 0x138   :  { %180 = vrot.lane.b32.xlu1 %v93_v5, %s1441_s16 }
 0x13a   :  { %196 = vrot.lane.b32.xlu0 %v192_v20, %s1441_s16 }
 0x13c   :  { %198 = vrot.lane.b32.xlu1 %v193_v22, %s1441_s16 }
 0x13e   :  { %204 = vrot.lane.b32.xlu0 %v164_v23, %s1438_s3 }
 0x140   :  { %206 = vrot.lane.b32.xlu1 %v165_v24, %s1438_s3 }
 0x1a4   :  { %v231_v27 = vpop.permute.xlu0 %230 }
 0x1a5   :  { %v236_v31 = vadd.f32 %v231_v27, %v218_v28 }
 0x1a6   :  { %v233_v30 = vpop.permute.xlu1 %232 }
 0x1a7   :  { %v237_v32 = vadd.f32 %v233_v30, %v219_v29 }
 0x1a8   :  { %v179_v33 = vpop.permute.xlu0 %178 }
 0x1a9   :  { %v1573_v34 = vpack.c.bf16 %v237_v32, %v236_v31  ;;  %v184_v37 = vmul.f32 %v179_v33, %v157_v11 }
 0x1aa   :  { %v181_v35 = vpop.permute.xlu1 %180 }
 0x1ab   :  { %262 = vrot.lane.b32.xlu0 %v1573_v34, %s1442_s17  ;;  %v185_v38 = vmul.f32 %v181_v35, %v160_v15 }
 0x1ac   :  { %v197_v36 = vpop.permute.xlu0 %196 }
 0x1ad   :  { %v202_v40 = vadd.f32 %v197_v36, %v184_v37 }
 0x1ae   :  { %v199_v39 = vpop.permute.xlu1 %198 }
 0x1af   :  { %v203_v41 = vadd.f32 %v199_v39, %v185_v38 }
 0x1b0   :  { %v205_v42 = vpop.permute.xlu0 %204 }
 0x1b1   :  { %v1577_v43 = vpack.c.bf16 %v203_v41, %v202_v40  ;;  %v210_v45 = vsub.f32 %v164_v23, %v205_v42 }
 0x1b2   :  { %v207_v44 = vpop.permute.xlu1 %206 }
 0x1b3   :  { %v211_v46 = vsub.f32 %v165_v24, %v207_v44  ;;  %259 = vrot.lane.b32.xlu1 %v1577_v43, %s1439_s14 }
 0x1b5   :  { %v1581_v47 = vpack.c.bf16 %v211_v46, %v210_v45 }
 0x1b7   :  { %168 = vrot.lane.b32.xlu1 %v164_v23, %s1439_s14  ;;  %313 = vrot.lane.b32.xlu0 %v1581_v47, %s1429_s25  ;;  %s1444_s25 = smov 88  }
 0x1bb   :  { %170 = vrot.lane.b32.xlu0 %v165_v24, %s1439_s14 }
 0x21d   :  { %v263_v48 = vpop.permute.xlu0 %262 }
 0x21e   :  { %v1588_v49 = vsel %vm264_vm2, %v263_v48, 0 }
 0x21f   :  { %1132 = vmatpush3.bf16.xpose.msra.mxu1 %v1588_v49 }
 0x220   :  { %1137 = vmatprep.subr.bf16.mxu1 %v1436_v0 }
 0x225   :  { %v260_v50 = vpop.permute.xlu1 %259 }
 0x226   :  { %1134 = vmatmul.mubr.msk.bf16.vlgmr.msra.gmra.mrb[0].mxu1 %vm264_vm2, %v260_v50 }
 0x227   :  { %1139 = vmatprep.mubr.msk.bf16.mxu1 %vm1437_vm0, %v1436_v0 }
 0x229   :  { %v314_v51 = vpop.permute.xlu0 %313  ;;  %v169_v53 = vpop.permute.xlu1 %168 }
 0x22a   :  { %v1596_v52 = vsel %vm264_vm2, %v314_v51, 0  ;;  %v174_v55 = vsub.f32 %v164_v23, %v169_v53 }
 0x22b   :  { %1138 = vmatpush3.bf16.xpose.msra.mxu1 %v1596_v52 }
 0x22c   :  { %1143 = vmatprep.subr.bf16.mxu1 %v1436_v0 }
 0x22d   :  { %v171_v54 = vpop.permute.xlu0 %170 }
 0x22e   :  { %v175_v56 = vsub.f32 %v165_v24, %v171_v54 }
 0x230   :  { %v1600_v57 = vpack.c.bf16 %v175_v56, %v174_v55 }
 0x232   :  { %1140 = vmatmul.mubr.msk.bf16.vlgmr.msra.gmra.mrb[0].mxu1 %vm264_vm2, %v1600_v57 }
 0x233   :  { %1145 = vmatprep.mubr.msk.bf16.mxu1 %vm1437_vm0, %v1436_v0 }
 0x305   :  { %v355_v1 = vpop.f32.mrb[0].mxu1 }
 0x306   :  { %v362_v4 = vmul.f32 0.25, %v355_v1  ;;  %v1141_v5 = vpop.f32.mrb[1].mxu1 }
 0x307   :  { %v358_v6 = vpop.f32.mrb[2].mxu1 }
 0x308   :  { %v363_v8 = vmul.f32 0.25, %v358_v6  ;;  %v1142_v9 = vpop.f32.mrb[3].mxu1  ;;  %v364_v10 = vadd.f32 %v362_v4, %v1606_v3 }
 0x30a   :  { %v367_v11 = vsel %vm366_vm9, %v364_v10, -inf  ;;  %v365_v12 = vadd.f32 %v363_v8, %v1608_v7 }
 0x30b   :  { %368 = vmax.xlane.f32.xlu1 %v367_v11 }
 0x30c   :  { %v370_v13 = vsel %vm366_vm9, %v365_v12, -inf }
 0x30d   :  { %371 = vmax.xlane.f32.xlu0 %v370_v13 }
 0x398   :  { %v369_v14 = vpop.xlane.xlu1 %368 }
 0x399   :  { %v373_v15 = vsub.f32 %v364_v10, %v369_v14 }
 0x39a   :  { %v372_v16 = vpop.xlane.xlu0 %371 }
 0x39b   :  { %v375_v17 = vmul.f32 1.442695, %v373_v15  ;;  %v374_v18 = vsub.f32 %v365_v12, %v372_v16 }
 0x39d   :  { %1278 = vpow2.f32 %v375_v17  ;;  %v377_v20 = vmul.f32 1.442695, %v374_v18 }
 0x39f   :  { %1280 = vpow2.f32 %v377_v20 }
 0x3a7   :  { %v1279_v21 = vpop.eup %1278 }
 0x3a8   :  { %v379_v22 = vsel %vm366_vm9, %v1279_v21, 0.0 }
 0x3a9   :  { %v1281_v23 = vpop.eup %1280  ;;  %380 = vadd.xlane.f32.xlu0 %v379_v22 }
 0x3aa   :  { %v382_v24 = vsel %vm366_vm9, %v1281_v23, 0.0 }
 0x3ab   :  { %383 = vadd.xlane.f32.xlu1 %v382_v24 }
 0x3bc   :  { %438 = vrot.lane.b32.xlu1 %v1577_v43, %s1444_s25 }
 0x3bf   :  { %391 = vrot.lane.b32.xlu0 %v1564_v19, %s1441_s16 }
 0x3c0   :  { %485 = vrot.lane.b32.xlu1 %v1600_v57, %s1445_s18 }
 0x436   :  { %v381_v25 = vpop.xlane.xlu0 %380 }
 0x437   :  { %1282 = vrcp.f32 %v381_v25 }
 0x438   :  { %v384_v26 = vpop.xlane.xlu1 %383 }
 0x439   :  { %1284 = vrcp.f32 %v384_v26 }
 0x43a   :  { %v392_v27 = vpop.permute.xlu0 %391 }
 0x43b   :  { %1144 = vmatpush3.bf16.msra.mxu1 %v392_v27  ;;  %1162 = vmatpush3.bf16.msra.mxu0 %v392_v27 }
 0x43c   :  { %1149 = vmatprep.subr.bf16.mxu1 %v1436_v0  ;;  %1167 = vmatprep.subr.bf16.mxu0 %v1436_v0  ;;  %v439_v33 = vpop.permute.xlu1 %438 }
 0x440   :  { %v486_v35 = vpop.permute.xlu1 %485 }
 0x441   :  { %v1283_v28 = vpop.eup %1282 }
 0x442   :  { %v387_v30 = vmul.f32 %v1283_v28, %v1279_v21 }
 0x443   :  { %v1285_v29 = vpop.eup %1284 }
 0x444   :  { %v388_v31 = vmul.f32 %v1285_v29, %v1281_v23 }
 0x446   :  { %v389_v32 = vpack.c.bf16 %v388_v31, %v387_v30 }
 0x448   :  { %1146 = vmatmul.mubr.msk.bf16.vlgmr.msra.gmra.mrb[4].mxu1 %vm366_vm9, %v389_v32 }
 0x449   :  { %1150 = vmatpush3.bf16.xpose.msra.mxu1 %v1588_v49  ;;  %1151 = vmatprep.mubr.msk.bf16.mxu1 %vm1437_vm0, %v1436_v0 }
 0x44a   :  { %1155 = vmatprep.subr.bf16.mxu1 %v1436_v0 }
 0x450   :  { %1152 = vmatmul.mubr.msk.bf16.vlgmr.msra.gmra.mrb[8].mxu1 %vm264_vm2, %v439_v33 }
 0x451   :  { %1156 = vmatpush3.bf16.xpose.msra.mxu1 %v1596_v52  ;;  %1157 = vmatprep.mubr.msk.bf16.mxu1 %vm1437_vm0, %v1436_v0 }
 0x452   :  { %1179 = vmatprep.subr.bf16.mxu1 %v1436_v0 }
 0x45c   :  { %1158 = vmatmul.mubr.msk.bf16.vlgmr.msra.gmra.mrb[8].mxu1 %vm264_vm2, %v486_v35 }
 0x45d   :  { %1181 = vmatprep.mubr.msk.bf16.mxu1 %vm1437_vm0, %v1436_v0 }
 0x51b   :  { %v1635_v36 = vpop.f32.mrb[4].mxu1 }
 0x51c   :  { %v1147_v37 = vpop.f32.mrb[5].mxu1 }
 0x51d   :  { %v1637_v38 = vpop.f32.mrb[6].mxu1 }
 0x51e   :  { %v1148_v39 = vpop.f32.mrb[7].mxu1 }
 0x52f   :  { %v524_v40 = vpop.f32.mrb[8].mxu1 }
 0x530   :  { %v531_v41 = vmul.f32 0.25, %v524_v40  ;;  %v1159_v42 = vpop.f32.mrb[9].mxu1 }
 0x531   :  { %v527_v44 = vpop.f32.mrb[10].mxu1 }
 0x532   :  { %v532_v45 = vmul.f32 0.25, %v527_v44  ;;  %v1160_v46 = vpop.f32.mrb[11].mxu1  ;;  %v533_v48 = vadd.f32 %v531_v41, %v1606_v3 }
 0x534   :  { %v535_v49 = vsel %vm366_vm9, %v533_v48, -inf  ;;  %v534_v50 = vadd.f32 %v532_v45, %v1608_v7 }
 0x535   :  { %536 = vmax.xlane.f32.xlu0 %v535_v49 }
 0x536   :  { %v538_v51 = vsel %vm366_vm9, %v534_v50, -inf }
 0x537   :  { %539 = vmax.xlane.f32.xlu1 %v538_v51 }
 0x548   :  { %604 = vrot.lane.b32.xlu1 %v1573_v34, %s1446_s19 }
 0x54c   :  { %655 = vrot.lane.b32.xlu1 %v1581_v47, %s1447_s20 }
 0x550   :  { %653 = vrot.lane.b32.xlu1 %v1600_v57, %s1438_s3 }
 0x5c2   :  { %v537_v52 = vpop.xlane.xlu0 %536 }
 0x5c3   :  { %v541_v53 = vsub.f32 %v533_v48, %v537_v52 }
 0x5c4   :  { %v540_v54 = vpop.xlane.xlu1 %539 }
 0x5c5   :  { %v543_v55 = vmul.f32 1.442695, %v541_v53  ;;  %v542_v56 = vsub.f32 %v534_v50, %v540_v54 }
 0x5c7   :  { %1286 = vpow2.f32 %v543_v55  ;;  %v545_v58 = vmul.f32 1.442695, %v542_v56 }
 0x5c8   :  { %v605_v5 = vpop.permute.xlu1 %604 }
 0x5c9   :  { %1288 = vpow2.f32 %v545_v58  ;;  %v1651_v8 = vsel %vm264_vm2, %v605_v5, 0 }
 0x5cc   :  { %v656_v9 = vpop.permute.xlu1 %655 }
 0x5cd   :  { %v1659_v11 = vsel %vm264_vm2, %v656_v9, 0 }
 0x5d0   :  { %v654_v12 = vpop.permute.xlu1 %653 }
 0x5d1   :  { %v1287_v59 = vpop.eup %1286 }
 0x5d2   :  { %v547_v60 = vsel %vm366_vm9, %v1287_v59, 0.0 }
 0x5d3   :  { %v1289_v61 = vpop.eup %1288  ;;  %548 = vadd.xlane.f32.xlu0 %v547_v60 }
 0x5d4   :  { %v550_v34 = vsel %vm366_vm9, %v1289_v61, 0.0 }
 0x5d7   :  { %551 = vadd.xlane.f32.xlu0 %v550_v34 }
 0x5ed   :  { %602 = vrot.lane.b32.xlu0 %v1577_v43, %s1448_s21 }
 0x660   :  { %v549_v47 = vpop.xlane.xlu0 %548 }
 0x661   :  { %1290 = vrcp.f32 %v549_v47 }
 0x664   :  { %v552_v62 = vpop.xlane.xlu0 %551 }
 0x665   :  { %1292 = vrcp.f32 %v552_v62 }
 0x668   :  { %v603_v10 = vpop.permute.xlu0 %602 }
 0x66b   :  { %v1291_v63 = vpop.eup %1290 }
 0x66c   :  { %v555_v2 = vmul.f32 %v1291_v63, %v1287_v59 }
 0x66f   :  { %v1293_v1 = vpop.eup %1292 }
 0x670   :  { %v556_v4 = vmul.f32 %v1293_v1, %v1289_v61 }
 0x672   :  { %v557_v6 = vpack.c.bf16 %v556_v4, %v555_v2 }
 0x674   :  { %1164 = vmatmul.mubr.msk.bf16.vlgmr.msra.gmra.mrb[4].mxu0 %vm366_vm9, %v557_v6 }
 0x675   :  { %1168 = vmatpush3.bf16.xpose.msra.mxu0 %v1651_v8  ;;  %1169 = vmatprep.mubr.msk.bf16.mxu0 %vm1437_vm0, %v1436_v0 }
 0x676   :  { %1173 = vmatprep.subr.bf16.mxu0 %v1436_v0 }
 0x67c   :  { %1170 = vmatmul.mubr.msk.bf16.vlgmr.msra.gmra.mrb[8].mxu0 %vm264_vm2, %v603_v10 }
 0x67d   :  { %1174 = vmatpush3.bf16.xpose.msra.mxu0 %v1659_v11  ;;  %1175 = vmatprep.mubr.msk.bf16.mxu0 %vm1437_vm0, %v1436_v0 }
 0x67e   :  { %1197 = vmatprep.subr.bf16.mxu0 %v1436_v0 }
 0x688   :  { %1176 = vmatmul.mubr.msk.bf16.vlgmr.msra.gmra.mrb[8].mxu0 %vm264_vm2, %v654_v12 }
 0x689   :  { %1199 = vmatprep.mubr.msk.bf16.mxu0 %vm1437_vm0, %v1436_v0 }
 0x747   :  { %v1669_v13 = vpop.f32.mrb[4].mxu0 }
 0x748   :  { %v1165_v14 = vpop.f32.mrb[5].mxu0 }
 0x749   :  { %v1671_v15 = vpop.f32.mrb[6].mxu0 }
 0x74a   :  { %v1255_v16 = vpack.i.bf16 %v1671_v15, %v1669_v13  ;;  %v1166_v17 = vpop.f32.mrb[7].mxu0  ;;  %v1276_v13 = vld [vmem:[#allocation7 + $0x10] sm:$0xff]   ;;  %v1277_v15 = vld [vmem:[#allocation7 + $0x18] sm:$0xff]  }
 0x75b   :  { %v697_v18 = vpop.f32.mrb[8].mxu0 }
 0x75c   :  { %v704_v20 = vmul.f32 0.25, %v697_v18  ;;  %v1177_v21 = vpop.f32.mrb[9].mxu0 }
 0x75d   :  { %v700_v22 = vpop.f32.mrb[10].mxu0 }
 0x75e   :  { %v705_v23 = vmul.f32 0.25, %v700_v22  ;;  %v1178_v24 = vpop.f32.mrb[11].mxu0  ;;  %v706_v25 = vadd.f32 %v704_v20, %v1606_v3 }
 0x75f   :  { %v1275_v24 = vld [vmem:[#allocation7 + $0x8] sm:$0xff]  }
 0x760   :  { %v708_v26 = vsel %vm366_vm9, %v706_v25, -inf  ;;  %v707_v27 = vadd.f32 %v705_v23, %v1608_v7  ;;  %v1274_v23 = vld [vmem:[#allocation7] sm:$0xff]  }
 0x761   :  { %709 = vmax.xlane.f32.xlu0 %v708_v26 }
 0x762   :  { %v711_v28 = vsel %vm366_vm9, %v707_v27, -inf }
 0x763   :  { %712 = vmax.xlane.f32.xlu1 %v711_v28 }
 0x774   :  { %731 = vrot.lane.b32.xlu1 %v1564_v19, %s1440_s15 }
 0x778   :  { %824 = vrot.lane.b32.xlu1 %v1600_v57, %s1449_s22 }
 0x7ee   :  { %v710_v29 = vpop.xlane.xlu0 %709 }
 0x7ef   :  { %v714_v30 = vsub.f32 %v706_v25, %v710_v29 }
 0x7f0   :  { %v713_v31 = vpop.xlane.xlu1 %712 }
 0x7f1   :  { %v716_v32 = vmul.f32 1.442695, %v714_v30  ;;  %v715_v33 = vsub.f32 %v707_v27, %v713_v31 }
 0x7f3   :  { %1294 = vpow2.f32 %v716_v32  ;;  %v718_v35 = vmul.f32 1.442695, %v715_v33 }
 0x7f4   :  { %v732_v37 = vpop.permute.xlu1 %731 }
 0x7f5   :  { %1296 = vpow2.f32 %v718_v35  ;;  %1180 = vmatpush3.bf16.msra.mxu1 %v732_v37  ;;  %1198 = vmatpush3.bf16.msra.mxu0 %v732_v37 }
 0x7f6   :  { %1185 = vmatprep.subr.bf16.mxu1 %v1436_v0  ;;  %1203 = vmatprep.subr.bf16.mxu0 %v1436_v0 }
 0x7fd   :  { %v1295_v39 = vpop.eup %1294 }
 0x7fe   :  { %v720_v19 = vsel %vm366_vm9, %v1295_v39, 0.0 }
 0x7ff   :  { %v1297_v40 = vpop.eup %1296  ;;  %721 = vadd.xlane.f32.xlu0 %v720_v19 }
 0x800   :  { %v723_v57 = vsel %vm366_vm9, %v1297_v40, 0.0 }
 0x803   :  { %724 = vadd.xlane.f32.xlu0 %v723_v57 }
 0x819   :  { %778 = vrot.lane.b32.xlu0 %v1577_v43, %s1450_s23  ;;  %v825_v43 = vpop.permute.xlu1 %824 }
 0x88c   :  { %v722_v41 = vpop.xlane.xlu0 %721 }
 0x88d   :  { %1298 = vrcp.f32 %v722_v41 }
 0x890   :  { %v725_v42 = vpop.xlane.xlu0 %724 }
 0x891   :  { %1300 = vrcp.f32 %v725_v42 }
 0x894   :  { %v779_v50 = vpop.permute.xlu0 %778 }
 0x897   :  { %v1299_v44 = vpop.eup %1298 }
 0x898   :  { %v728_v46 = vmul.f32 %v1299_v44, %v1295_v39 }
 0x89b   :  { %v1301_v45 = vpop.eup %1300 }
 0x89c   :  { %v729_v48 = vmul.f32 %v1301_v45, %v1297_v40 }
 0x89e   :  { %v730_v49 = vpack.c.bf16 %v729_v48, %v728_v46 }
 0x8a0   :  { %1182 = vmatmul.mubr.msk.bf16.vlgmr.msra.gmra.mrb[12].mxu1 %vm366_vm9, %v730_v49 }
 0x8a1   :  { %1186 = vmatpush3.bf16.xpose.msra.mxu1 %v1651_v8  ;;  %1187 = vmatprep.mubr.msk.bf16.mxu1 %vm1437_vm0, %v1436_v0 }
 0x8a2   :  { %1191 = vmatprep.subr.bf16.mxu1 %v1436_v0 }
 0x8a8   :  { %1188 = vmatmul.mubr.msk.bf16.vlgmr.msra.gmra.mrb[16].mxu1 %vm264_vm2, %v779_v50 }
 0x8a9   :  { %1192 = vmatpush3.bf16.xpose.msra.mxu1 %v1659_v11  ;;  %1193 = vmatprep.mubr.msk.bf16.mxu1 %vm1437_vm0, %v1436_v0 }
 0x8b4   :  { %1194 = vmatmul.mubr.msk.bf16.vlgmr.msra.gmra.mrb[16].mxu1 %vm264_vm2, %v825_v43 }
 0x973   :  { %v771_v51 = vpop.f32.mrb[12].mxu1 }
 0x974   :  { %v1183_v52 = vpop.f32.mrb[13].mxu1 }
 0x975   :  { %v774_v53 = vpop.f32.mrb[14].mxu1 }
 0x976   :  { %v1260_v54 = vpack.i.bf16 %v774_v53, %v771_v51  ;;  %v1184_v55 = vpop.f32.mrb[15].mxu1 }
 0x987   :  { %v863_v56 = vpop.f32.mrb[16].mxu1 }
 0x988   :  { %v870_v58 = vmul.f32 0.25, %v863_v56  ;;  %v1195_v59 = vpop.f32.mrb[17].mxu1 }
 0x989   :  { %v866_v60 = vpop.f32.mrb[18].mxu1 }
 0x98a   :  { %v871_v61 = vmul.f32 0.25, %v866_v60  ;;  %v1196_v34 = vpop.f32.mrb[19].mxu1  ;;  %v872_v47 = vadd.f32 %v870_v58, %v1606_v3 }
 0x98c   :  { %v874_v62 = vsel %vm366_vm9, %v872_v47, -inf  ;;  %v873_v63 = vadd.f32 %v871_v61, %v1608_v7 }
 0x98d   :  { %875 = vmax.xlane.f32.xlu1 %v874_v62 }
 0x98e   :  { %v877_v1 = vsel %vm366_vm9, %v873_v63, -inf }
 0x98f   :  { %878 = vmax.xlane.f32.xlu0 %v877_v1 }
 0xa1a   :  { %v876_v2 = vpop.xlane.xlu1 %875 }
 0xa1b   :  { %v880_v4 = vsub.f32 %v872_v47, %v876_v2 }
 0xa1c   :  { %v879_v5 = vpop.xlane.xlu0 %878 }
 0xa1d   :  { %v882_v6 = vmul.f32 1.442695, %v880_v4  ;;  %v881_v8 = vsub.f32 %v873_v63, %v879_v5 }
 0xa1f   :  { %1302 = vpow2.f32 %v882_v6  ;;  %v884_v9 = vmul.f32 1.442695, %v881_v8 }
 0xa21   :  { %1304 = vpow2.f32 %v884_v9 }
 0xa29   :  { %v1303_v10 = vpop.eup %1302 }
 0xa2a   :  { %v886_v11 = vsel %vm366_vm9, %v1303_v10, 0.0 }
 0xa2b   :  { %v1305_v3 = vpop.eup %1304  ;;  %887 = vadd.xlane.f32.xlu0 %v886_v11 }
 0xa2c   :  { %v889_v12 = vsel %vm366_vm9, %v1305_v3, 0.0 }
 0xa2d   :  { %890 = vadd.xlane.f32.xlu1 %v889_v12 }
 0xa3e   :  { %1261 = vrot.lane.b32.xlu1 %v1260_v54, %s1441_s16 }
 0xa41   :  { %1256 = vrot.lane.b32.xlu0 %v1255_v16, %s1440_s15 }
 0xab8   :  { %v888_v7 = vpop.xlane.xlu0 %887 }
 0xab9   :  { %1306 = vrcp.f32 %v888_v7 }
 0xaba   :  { %v891_v14 = vpop.xlane.xlu1 %890 }
 0xabb   :  { %1308 = vrcp.f32 %v891_v14 }
 0xabc   :  { %v1257_v29 = vpop.permute.xlu0 %1256 }
 0xabd   :  { %v1259_v30 = vunpack.i.h.bf16 %v1257_v29  ;;  %v1258_v31 = vunpack.i.l.bf16 %v1257_v29 }
 0xabe   :  { %v1262_v32 = vpop.permute.xlu1 %1261 }
 0xabf   :  { %v1264_v33 = vunpack.i.h.bf16 %v1262_v32  ;;  %v1263_v35 = vunpack.i.l.bf16 %v1262_v32  ;;  %v966_v37 = vsel %vm366_vm9, %v1637_v38, %v1259_v30 }
 0xac1   :  { %v969_v41 = vsel %vm967_vm10, %v966_v37, %v1264_v33 }
 0xac3   :  { %v1307_v17 = vpop.eup %1306 }
 0xac4   :  { %v894_v20 = vmul.f32 %v1307_v17, %v1303_v10 }
 0xac5   :  { %v1309_v18 = vpop.eup %1308 }
 0xac6   :  { %v895_v21 = vmul.f32 %v1309_v18, %v1305_v3 }
 0xac8   :  { %v896_v22 = vpack.c.bf16 %v895_v21, %v894_v20 }
 0xaca   :  { %1200 = vmatmul.mubr.msk.bf16.vlgmr.msra.gmra.mrb[12].mxu0 %vm366_vm9, %v896_v22 }
 0xacb   :  { %1211 = vmatprep.mubr.msk.bf16.mxu0 %vm1437_vm0, %v1436_v0  ;;  %1204 = vmatpush3.bf16.msra.mxu0 %v1274_v23 }
 0xacc   :  { %1205 = vmatprep.subr.bf16.mxu0 %v1436_v0 }
 0xacf   :  { %1206 = vmatpush3.bf16.msra.mxu0 %v1275_v24 }
 0xad0   :  { %1207 = vmatprep.subr.bf16.mxu0 %v1436_v0 }
 0xad3   :  { %1208 = vmatpush3.bf16.msra.mxu0 %v1276_v13 }
 0xad4   :  { %1209 = vmatprep.subr.bf16.mxu0 %v1436_v0  ;;  %v965_v0 = vsel %vm366_vm9, %v1635_v36, %v1258_v31 }
 0xad5   :  { %v968_v57 = vsel %vm967_vm10, %v965_v0, %v1263_v35 }
 0xad7   :  { %1210 = vmatpush3.bf16.msra.mxu0 %v1277_v15 }
 0xb9d   :  { %v934_v16 = vpop.f32.mrb[12].mxu0 }
 0xb9e   :  { %v1201_v25 = vpop.f32.mrb[13].mxu0 }
 0xb9f   :  { %v937_v26 = vpop.f32.mrb[14].mxu0 }
 0xba0   :  { %v1265_v27 = vpack.i.bf16 %v937_v26, %v934_v16  ;;  %v1202_v28 = vpop.f32.mrb[15].mxu0 }
 0xba2   :  { %1266 = vrot.lane.b32.xlu1 %v1265_v27, %s1442_s17 }
 0xc14   :  { %v1267_v39 = vpop.permute.xlu1 %1266 }
 0xc15   :  { %v1269_v19 = vunpack.i.h.bf16 %v1267_v39  ;;  %v1268_v40 = vunpack.i.l.bf16 %v1267_v39 }
 0xc17   :  { %v972_v42 = vsel %vm970_vm11, %v969_v41, %v1269_v19  ;;  %v971_v44 = vsel %vm970_vm11, %v968_v57, %v1268_v40 }
 0xc18   :  { %v973_v45 = vpack.c.bf16 %v972_v42, %v971_v44 }
 0xc1a   :  { %1212 = vmatmul.mubr.msk.bf16.vlgmr.msra.gmra.mrb[16].mxu0 %vm119_vm1, %v973_v45 }
 0xced   :  { %v1035_v46 = vpop.f32.mrb[16].mxu0 }
 0xcee   :  { %1042 = vst.msk [vmem:[#allocation10] sm:$0xff] %vm119_vm1, %v1035_v46  ;;  %v1213_v38 = vpop.f32.mrb[17].mxu0 }
 0xcef   :  { %v1038_v36 = vpop.f32.mrb[18].mxu0 }
 0xcf0   :  { %1043 = vst.msk [vmem:[#allocation10 + $0x8] sm:$0xff] %vm119_vm1, %v1038_v36  ;;  %v1214_v48 = vpop.f32.mrb[19].mxu0 }
 0xcf1   :  { %1409 = shalt.err (!%p1406_p8)
}
 0xcf2   :  { %s1410_s30 = scalar_lea.hbm %s1741_s4, 256 }
 0xcf3   :  { %p1411_p9 = scmp.ne.s32.totalorder %s1741_s4, %s1410_s30  ;;  %p1414_p10 = scmp.lt.u32.totalorder %s1410_s30, %s1741_s4 }
 0xcf5   :  { %p1416_p11 = pnand %p1414_p10, %p1411_p9 }
 0xcf7   :  { %1419 = shalt.err (!%p1416_p11)
}
 0xcf8   :  { %1055 = dma.vmem_to_hbm [thread:$0]  %s1050_s27, 256, %s1741_s4, [#allocation4], %s1432_s1, %s1432_s1, %s1433_s13  }
 0xcf9   :  { %1426 = dma.done.wait [#allocation4], 256  }
 0xcfa   :  { %1427 = vsyncadd [#allocation4], 4294967040 }
 0xcfb   :  { %1059 = vsyncpa [#allocation3], 1 }
 0xcfc   :  { %1060 = vsyncpa [#allocation6], 1 }
 0xcfd   :  { %1061 = vsyncpa [#allocation9], 1 }
 0xcfe   :  { %1062 = vsyncpa [#allocation4], 1 }

</bundles_post_ra>
